<compile_context>
chip_gen: v7x
topology: tpu7x:2x2x1
jax: 0.10.0
libtpu: 0.0.40
codegen_flags: <defaults>
</compile_context>

<pallas_src>
import math
import functools

import jax
import jax.numpy as jnp
from jax.experimental import pallas as pl
from jax.experimental.pallas import tpu as pltpu


# -------------------------- parameter setup -------------------------------- #

def make_pe_table(d_model, max_len=256, dtype=jnp.float32):
    """Deterministic positional-encoding buffer, identical to the PyTorch init."""
    position = jnp.arange(max_len, dtype=jnp.float32)[:, None]            # (max_len, 1)
    div_term = jnp.exp(
        jnp.arange(0, d_model, 2, dtype=jnp.float32)
        * (-(math.log(10000.0) / d_model))
    )                                                                     # (d_model//2,)
    ang = position * div_term                                             # (max_len, d/2)
    pe = jnp.zeros((max_len, d_model), dtype=jnp.float32)
    pe = pe.at[:, 0::2].set(jnp.sin(ang))
    pe = pe.at[:, 1::2].set(jnp.cos(ang))
    return pe.astype(dtype)


# ------------------------------ kernels ------------------------------------ #

def _pe_add_kernel(x_ref, pe_ref, o_ref):
    # eval-mode forward: x + pe (dropout is identity in eval).
    # x_ref: (tb, ts, D); pe_ref: (1, ts, D) broadcast over the batch dim.
    o_ref[...] = x_ref[...] + pe_ref[...]


def _pe_add_dropout_kernel(x_ref, pe_ref, bits_ref, o_ref, *, thresh, scale):
    # training-mode forward: inverted dropout on (x + pe).
    # Drop with probability p  <=>  bits < thresh, thresh = round(p * 2^32).
    # Keep path folds the 1/(1-p) scale into the select (minimal VALU work).
    y = x_ref[...] + pe_ref[...]
    keep = bits_ref[...] >= jnp.uint32(thresh)
    o_ref[...] = jnp.where(keep, y * scale, jnp.zeros_like(y))


# --------------------------- tiling heuristics ------------------------------ #

def _pick_tiles(B, S, D, itemsize, target_bytes=2 << 20):
    """Choose (tb, ts) for 3-D blocks (tb, ts, D) obeying the (8,128) rule.

    The lane dim D is always full-extent (legal for any D).  ts is either the
    full seq length or a multiple of the dtype's sublane granularity, so the
    cdiv-based ragged last block stays layout-legal.  tb (leading dim) has no
    alignment rule and grows to fill the per-block budget.
    """
    gran = {4: 8, 2: 16, 1: 32}.get(itemsize, 8)
    row_bytes = max(D * itemsize, 1)
    rows_budget = max(gran, (target_bytes // row_bytes) // gran * gran)
    ts = S if rows_budget >= S else rows_budget
    tb = int(max(1, min(B, target_bytes // (ts * row_bytes))))
    return tb, ts


# ------------------------------ wrapper ------------------------------------ #

def positional_encoding_forward(x, pe_table, *, dropout_p=0.1,
                                training=False, rng_key=None):
    """x: (B, S, D). Returns dropout(x + pe[:S]) exactly like the PyTorch module."""
    B, S, D = x.shape
    max_len = pe_table.shape[0]
    assert S <= max_len, f"sequence length {S} exceeds pe max_len {max_len}"
    # TODO(synk): for best store efficiency pad d_model to a multiple of 128 at
    # the model level when D % 128 != 0 (full-extent D blocks are correct but
    # lane-masked).

    itemsize = jnp.dtype(x.dtype).itemsize
    tb, ts = _pick_tiles(B, S, D, itemsize)
    grid = (pl.cdiv(S, ts), pl.cdiv(B, tb))          # seq outer, batch inner (fast)

    pe3 = pe_table[:S, :].astype(x.dtype)[None]      # (1, S, D)

    x_spec = pl.BlockSpec((tb, ts, D), lambda s, b: (b, s, 0))
    pe_spec = pl.BlockSpec((1, ts, D), lambda s, b: (0, s, 0))
    out_spec = pl.BlockSpec((tb, ts, D), lambda s, b: (b, s, 0))
    out_shape = jax.ShapeDtypeStruct((B, S, D), x.dtype)

    cparams = pltpu.CompilerParams(
        dimension_semantics=("parallel", "parallel"),
        vmem_limit_bytes=32 * 1024 * 1024,
    )

    n_elem = B * S * D
    do_dropout = training and float(dropout_p) > 0.0
    cost = pl.CostEstimate(
        flops=n_elem * (3 if do_dropout else 1),
        transcendentals=0,
        bytes_accessed=2 * n_elem * itemsize + S * D * itemsize
        + (4 * n_elem if do_dropout else 0),
    )

    if not do_dropout:
        return pl.pallas_call(
            _pe_add_kernel,
            out_shape=out_shape,
            grid_spec=pltpu.PrefetchScalarGridSpec(
                num_scalar_prefetch=0,
                grid=grid,
                in_specs=[x_spec, pe_spec],
                out_specs=out_spec,
            ),
            compiler_params=cparams,
            cost_estimate=cost,
        )(x, pe3)

    # training-mode dropout path.
    # NOTE: callers must thread a fresh rng_key per training step, or the mask
    # repeats across steps.
    if rng_key is None:
        rng_key = jax.random.PRNGKey(0)
    p = float(dropout_p)
    thresh = min(int(round(p * 2.0 ** 32)), 2 ** 32 - 1)
    scale = 1.0 / (1.0 - p)
    bits = jax.random.bits(rng_key, (B, S, D), dtype=jnp.uint32)

    return pl.pallas_call(
        functools.partial(_pe_add_dropout_kernel, thresh=thresh, scale=scale),
        out_shape=out_shape,
        grid_spec=pltpu.PrefetchScalarGridSpec(
            num_scalar_prefetch=0,
            grid=grid,
            in_specs=[x_spec, pe_spec,
                      pl.BlockSpec((tb, ts, D), lambda s, b: (b, s, 0))],
            out_specs=out_spec,
        ),
        compiler_params=cparams,
        cost_estimate=cost,
    )(x, pe3, bits)


# ------------------------------ main --------------------------------------- #

if __name__ == "__main__":
    # Small shapes consistent with the module: batch=2, seq=8, d_model=32.
    B, S, D = 2, 8, 32
    max_len = 256
    dropout_p = 0.1

    key = jax.random.PRNGKey(0)
    kx, kdrop = jax.random.split(key)
    x = jax.random.normal(kx, (B, S, D), dtype=jnp.float32)
    pe_table = make_pe_table(D, max_len=max_len, dtype=jnp.float32)

    # Eval-mode forward (dropout is identity) -> compare with plain-JAX reference.
    out = positional_encoding_forward(x, pe_table, dropout_p=dropout_p,
                                      training=False)
    out = jax.block_until_ready(out)
    ref = x + pe_table[None, :S, :]
    assert out.shape == (B, S, D)
    assert jnp.allclose(out, ref, atol=1e-6, rtol=1e-6)

    # Training-mode forward: every kept element equals ref / (1 - p), rest are 0.
    out_tr = positional_encoding_forward(x, pe_table, dropout_p=dropout_p,
                                         training=True, rng_key=kdrop)
    out_tr = jax.block_until_ready(out_tr)
    scale = 1.0 / (1.0 - dropout_p)
    kept = out_tr != 0.0
    assert out_tr.shape == (B, S, D)
    assert bool(jnp.all(jnp.where(kept, jnp.abs(out_tr - ref * scale) < 1e-5, True)))

    print("KERNEL_OK")
</pallas_src>

<mosaic_0001>
module attributes {stable_mosaic.version = 11 : i64} {
  func.func @_pe_add_kernel(%arg0: i32, %arg1: i32, %arg2: memref<2x8x32xf32, #tpu.memory_space<vmem>>, %arg3: memref<1x8x32xf32, #tpu.memory_space<vmem>>, %arg4: memref<2x8x32xf32, #tpu.memory_space<vmem>>) attributes {dimension_semantics = [#tpu.dimension_semantics<parallel>, #tpu.dimension_semantics<parallel>], iteration_bounds = array<i64: 1, 1>, scalar_prefetch = 0 : i64, scratch_operands = 0 : i64, tpu.core_type = #tpu.core_type<tc>, window_params = [{transform_indices = @transform_0, window_bounds = array<i64: 2, 8, 32>}, {transform_indices = @transform_1, window_bounds = array<i64: 1, 8, 32>}, {transform_indices = @transform_2, window_bounds = array<i64: 2, 8, 32>}]} {
    %c0 = arith.constant 0 : index
    %c0_0 = arith.constant 0 : index
    %c0_1 = arith.constant 0 : index
    %0 = vector.load %arg2[%c0, %c0_0, %c0_1] : memref<2x8x32xf32, #tpu.memory_space<vmem>>, vector<2x8x32xf32>
    %c0_2 = arith.constant 0 : index
    %c0_3 = arith.constant 0 : index
    %c0_4 = arith.constant 0 : index
    %1 = vector.load %arg3[%c0_2, %c0_3, %c0_4] : memref<1x8x32xf32, #tpu.memory_space<vmem>>, vector<1x8x32xf32>
    %2 = vector.broadcast %1 : vector<1x8x32xf32> to vector<2x8x32xf32>
    %3 = arith.addf %0, %2 : vector<2x8x32xf32>
    %c0_5 = arith.constant 0 : index
    %c0_6 = arith.constant 0 : index
    %c0_7 = arith.constant 0 : index
    %4 = vector.load %arg4[%c0_5, %c0_6, %c0_7] : memref<2x8x32xf32, #tpu.memory_space<vmem>>, vector<2x8x32xf32>
    tpu.vector_store %arg4[%c0_5, %c0_6, %c0_7], %3 {strides = array<i32>} : memref<2x8x32xf32, #tpu.memory_space<vmem>>, vector<2x8x32xf32>,
    return
  }
  func.func @transform_0(%arg0: i32, %arg1: i32) -> (i32, i32, i32) {
    %c0_i32 = arith.constant 0 : i32
    %c0_i32_0 = arith.constant 0 : i32
    return %arg1, %arg0, %c0_i32 : i32, i32, i32
  }
  func.func @transform_1(%arg0: i32, %arg1: i32) -> (i32, i32, i32) {
    %c0_i32 = arith.constant 0 : i32
    %c0_i32_0 = arith.constant 0 : i32
    %c0_i32_1 = arith.constant 0 : i32
    return %c0_i32, %arg0, %c0_i32_0 : i32, i32, i32
  }
  func.func @transform_2(%arg0: i32, %arg1: i32) -> (i32, i32, i32) {
    %c0_i32 = arith.constant 0 : i32
    %c0_i32_0 = arith.constant 0 : i32
    return %arg1, %arg0, %c0_i32 : i32, i32, i32
  }
}

</mosaic_0001>

<bundles_post_ra>
// kernel: tpu_custom_call.1
= control target key start
LH: loop header
LB: loop body
LE: loop exit
PB: predicated region body
PF: predicated region fallthrough
CT: control target
= control target key end

     0   :  { %7 = vsyncpa [#allocation3], 0  ;;  %s203_s0 = inlined_call_operand.hbm [shape: f32[2,8,32], index: 0, kind: input, shape index: {}]   ;;  %s204_s1 = inlined_call_operand.hbm [shape: f32[1,8,32], index: 1, kind: input, shape index: {}]   ;;  %s205_s2 = inlined_call_operand.hbm [shape: f32[2,8,32], index: 2, kind: output, shape index: {}]  }
   0x1   :  { %8 = vsyncpa [#allocation6], 0 }
   0x2   :  { %9 = vsyncpa [#allocation4], 0  ;;  %s141_s9 = smov [#allocation2]   ;;  %s69_s13 = scalar_lea.hbm %s203_s0, 256 }
   0x3   :  { %s15_s10 = sshll.u32 %s141_s9, 4  ;;  %p70_p0 = scmp.ne.s32.totalorder %s203_s0, %s69_s13  ;;  %s16_s10 = int_to_ptr.vmem [resolvable:$true] %s15_s10 }
   0x4   :  { %p73_p1 = scmp.lt.u32.totalorder %s69_s13, %s203_s0 }
   0x6   :  { %p75_p2 = pnand %p73_p1, %p70_p0 }
   0x8   :  { %78 = shalt.err (!%p75_p2)
}
   0x9   :  { %s79_s18 = scalar_lea.vmem %s16_s10, 256  ;;  %p84_p4 = scmp.lt.s32.totalorder %s16_s10, %s16_s10 }
   0xa   :  { %p80_p3 = scmp.ne.s32.totalorder %s16_s10, %s79_s18  ;;  %p85_p5 = scmp.lt.s32.totalorder %s79_s18, %s79_s18 }
   0xc   :  { %p86_p6 = por %p85_p5, %p84_p4 }
   0xe   :  { %p87_p7 = pnand %p86_p6, %p80_p3 }
  0x10   :  { %90 = shalt.err (!%p87_p7)
}
  0x11   :  { %s142_s19 = smov 128   ;;  %s143_s20 = smov 8  }
  0x12   :  { %21 = dma.hbm_to_vmem [thread:$0]  %s203_s0, 256, %s16_s10, [#allocation3], %s142_s19, %s142_s19, %s143_s20  }
  0x13   :  { %s144_s23 = smov [#allocation5]   ;;  %s91_s27 = scalar_lea.hbm %s204_s1, 128 }
  0x14   :  { %s28_s24 = sshll.u32 %s144_s23, 4  ;;  %p92_p8 = scmp.ne.s32.totalorder %s204_s1, %s91_s27  ;;  %s29_s24 = int_to_ptr.vmem [resolvable:$true] %s28_s24 }
  0x15   :  { %p95_p9 = scmp.lt.u32.totalorder %s91_s27, %s204_s1 }
  0x17   :  { %p97_p10 = pnand %p95_p9, %p92_p8 }
  0x19   :  { %100 = shalt.err (!%p97_p10)
}
  0x1a   :  { %s101_s4 = scalar_lea.vmem %s29_s24, 128  ;;  %p106_p12 = scmp.lt.s32.totalorder %s29_s24, %s29_s24 }
  0x1b   :  { %p102_p11 = scmp.ne.s32.totalorder %s29_s24, %s101_s4  ;;  %p107_p13 = scmp.lt.s32.totalorder %s101_s4, %s101_s4 }
  0x1d   :  { %p108_p0 = por %p107_p13, %p106_p12 }
  0x1f   :  { %p109_p1 = pnand %p108_p0, %p102_p11 }
  0x21   :  { %112 = shalt.err (!%p109_p1)
}
  0x22   :  { %31 = dma.hbm_to_vmem [thread:$0]  %s204_s1, 128, %s29_s24, [#allocation6]  }
  0x23   :  { %135 = dma.done.wait [#allocation3], 256  }
  0x24   :  { %136 = vsyncadd [#allocation3], 4294967040 }
  0x25   :  { %137 = dma.done.wait [#allocation6], 128  }
  0x26   :  { %138 = vsyncadd [#allocation6], 4294967168  ;;  %s145_s6 = smov [#allocation7]   ;;  %v38_v0 = vld [vmem:[#allocation2] sm:$0xff]  ;;  %v40_v1 = vld [vmem:[#allocation5] sm:$0xff]  ;;  %vm43_vm0 = vcmask 261120  }
  0x27   :  { %s51_s7 = sshll.u32 %s145_s6, 4  ;;  %v39_v2 = vld [vmem:[#allocation2 + $0x8] sm:$0xff]  ;;  %v41_v3 = vadd.f32 %v40_v1, %v38_v0  ;;  %s52_s7 = int_to_ptr.vmem [resolvable:$true] %s51_s7 }
  0x28   :  { %v42_v4 = vadd.f32 %v40_v1, %v39_v2  ;;  %s113_s8 = scalar_lea.vmem %s52_s7, 256  ;;  %p118_p3 = scmp.lt.s32.totalorder %s52_s7, %s52_s7 }
  0x29   :  { %44 = vst.msk [vmem:[#allocation7] sm:$0xff] %vm43_vm0, %v41_v3  ;;  %p114_p2 = scmp.ne.s32.totalorder %s52_s7, %s113_s8  ;;  %p119_p4 = scmp.lt.s32.totalorder %s113_s8, %s113_s8 }
  0x2a   :  { %45 = vst.msk [vmem:[#allocation7 + $0x8] sm:$0xff] %vm43_vm0, %v42_v4 }
  0x2b   :  { %p120_p5 = por %p119_p4, %p118_p3 }
  0x2d   :  { %p121_p6 = pnand %p120_p5, %p114_p2 }
  0x2f   :  { %124 = shalt.err (!%p121_p6)
}
  0x30   :  { %s125_s10 = scalar_lea.hbm %s205_s2, 256 }
  0x31   :  { %p126_p7 = scmp.ne.s32.totalorder %s205_s2, %s125_s10  ;;  %p129_p8 = scmp.lt.u32.totalorder %s125_s10, %s205_s2 }
  0x33   :  { %p131_p9 = pnand %p129_p8, %p126_p7 }
  0x35   :  { %134 = shalt.err (!%p131_p9)
}
  0x36   :  { %57 = dma.vmem_to_hbm [thread:$0]  %s52_s7, 256, %s205_s2, [#allocation4], %s142_s19, %s142_s19, %s143_s20  }
  0x37   :  { %139 = dma.done.wait [#allocation4], 256  }
  0x38   :  { %140 = vsyncadd [#allocation4], 4294967040 }
  0x39   :  { %61 = vsyncpa [#allocation3], 1 }
  0x3a   :  { %62 = vsyncpa [#allocation6], 1 }
  0x3b   :  { %63 = vsyncpa [#allocation4], 1 }

</bundles_post_ra>
